<compile_context>
chip_gen: v7x
topology: tpu7x:2x2x1
jax: 0.10.0
libtpu: 0.0.40
codegen_flags: <defaults>
</compile_context>

<pallas_src>
import functools

import jax
import jax.numpy as jnp
from jax.experimental import pallas as pl
from jax.experimental.pallas import tpu as pltpu

LANE = 128                      # TPU lane width
VMEM_LIMIT = 32 * 1024 * 1024   # explicit scoped-VMEM budget (safe on v5e..v7x)


def _round_up(x, m):
    return (x + m - 1) // m * m


def _pick_tile(nblocks, max_blocks, min_tiles=1):
    """Largest 128-multiple tile (<= max_blocks*128) that divides nblocks*128
    while keeping at least `min_tiles` tiles along that axis."""
    best = 1
    for g in range(1, nblocks + 1):
        if nblocks % g == 0 and g <= max_blocks and nblocks // g >= min_tiles:
            best = g
    return best * LANE


def _pad2(a, rows, cols, dtype):
    out = jnp.zeros((rows, cols), dtype)
    return out.at[: a.shape[0], : a.shape[1]].set(a.astype(dtype))


# --------------------------------------------------------------------------
# Kernels
# --------------------------------------------------------------------------
def _transform_x_kernel(x_ref, d_ref, w1_ref, out_ref):
    """out = (X @ W1) * D^-1/2  (row-scaled layer-1 feature transform), bf16."""
    xw = jnp.dot(x_ref[...], w1_ref[...], preferred_element_type=jnp.float32)
    out_ref[...] = (xw * d_ref[...]).astype(out_ref.dtype)


def _layer1_kernel(cid_ref, cnt_ref, a_ref, xw_ref, d_ref, b1_ref, w2_ref,
                   hw_ref, acc_ref):
    """acc += A_block @ (scaled X@W1) over non-empty A blocks only;
    finalize: H = relu(D^-1/2*acc + b1), then fused layer-2 transform:
    out = (H @ W2) * D^-1/2 (bf16)."""
    i = pl.program_id(0)
    k = pl.program_id(1)

    @pl.when(k == 0)
    def _():
        acc_ref[...] = jnp.zeros_like(acc_ref)

    @pl.when(k < cnt_ref[i])           # skip padded (all-zero) block steps
    def _():
        a = a_ref[...].astype(jnp.float32).astype(jnp.bfloat16)  # int8 -> bf16
        acc_ref[...] += jnp.dot(a, xw_ref[...],
                                preferred_element_type=jnp.float32)

    @pl.when(k == pl.num_programs(1) - 1)
    def _():
        h = jnp.maximum(acc_ref[...] * d_ref[...] + b1_ref[...], 0.0)
        # TODO(synk): F.dropout(h, training=self.training) — identity
        # (eval-mode semantics); stochastic dropout omitted for determinism.
        hw = jnp.dot(h.astype(w2_ref.dtype), w2_ref[...],
                     preferred_element_type=jnp.float32)
        hw_ref[...] = (hw * d_ref[...]).astype(hw_ref.dtype)


def _layer2_kernel(cid_ref, cnt_ref, a_ref, hw_ref, d_ref, b2_ref,
                   out_ref, acc_ref, *, num_classes):
    """acc += A_block @ (scaled H@W2) over non-empty blocks; finalize:
    z = D^-1/2*acc + b2, log_softmax over real classes (padded lanes masked)."""
    i = pl.program_id(0)
    k = pl.program_id(1)

    @pl.when(k == 0)
    def _():
        acc_ref[...] = jnp.zeros_like(acc_ref)

    @pl.when(k < cnt_ref[i])
    def _():
        a = a_ref[...].astype(jnp.float32).astype(jnp.bfloat16)  # int8 -> bf16
        acc_ref[...] += jnp.dot(a, hw_ref[...],
                                preferred_element_type=jnp.float32)

    @pl.when(k == pl.num_programs(1) - 1)
    def _():
        z = acc_ref[...] * d_ref[...] + b2_ref[...]
        col = jax.lax.broadcasted_iota(jnp.int32, z.shape, 1)
        z = jnp.where(col < num_classes, z, -1e30)
        m = jnp.max(z, axis=1, keepdims=True)
        e = jnp.exp(z - m)
        lse = jnp.log(jnp.sum(e, axis=1, keepdims=True)) + m
        out_ref[...] = (z - lse).astype(out_ref.dtype)


# --------------------------------------------------------------------------
# Graph preparation (hoisted out of the forward so it can be cached; the
# GCNConv layers use cached=True, the graph is static).
# --------------------------------------------------------------------------
def prepare_graph(edge_index, num_nodes):
    """Dense A+I (int8, padded to a multiple of 128), D^-1/2, tile sizes and a
    per-row-tile list of non-empty column blocks (for block-sparse skipping).

    Edge weights: .set(1.0) deduplicates repeated edges; the diagonal is SET to
    1.0 (PyG add_remaining_self_loops convention — explicit self-edges keep
    weight 1.0, missing ones are added).
    """
    n_pad = _round_up(num_nodes, LANE)           # lane padding only
    nblocks = n_pad // LANE
    tm = _pick_tile(nblocks, max_blocks=16,      # row tile <= 2048,
                    min_tiles=2 if nblocks >= 2 else 1)   # >=2 tiles for v7x
    tk = _pick_tile(nblocks, max_blocks=8)       # reduction tile <= 1024
    tmx = _pick_tile(nblocks, max_blocks=4)      # small row tile for X@W1

    adj = jnp.zeros((n_pad, n_pad), dtype=jnp.float32)
    adj = adj.at[edge_index[0], edge_index[1]].set(1.0)
    diag = jnp.arange(num_nodes)
    adj = adj.at[diag, diag].set(1.0)            # self-loops on real nodes only

    deg = jnp.sum(adj, axis=1)
    d_inv_sqrt = jnp.where(deg > 0.0,
                           jax.lax.rsqrt(jnp.maximum(deg, 1.0e-12)),
                           0.0).astype(jnp.float32)

    # Block-sparsity structure at (tm, tk) granularity.
    nb_r, nb_c = n_pad // tm, n_pad // tk
    blk_nz = jnp.any(adj.reshape(nb_r, tm, nb_c, tk) != 0.0, axis=(1, 3))
    counts = jnp.sum(blk_nz, axis=1).astype(jnp.int32)          # (nb_r,)
    max_count = max(int(jnp.max(counts)), 1)                    # static

    col = jnp.arange(nb_c, dtype=jnp.int32)
    order = jnp.argsort(jnp.where(blk_nz, col[None, :], nb_c + col[None, :]),
                        axis=1)
    cids = order[:, :max_count].astype(jnp.int32)               # (nb_r, max_count)
    # Padded steps repeat the last valid block index so their DMA is elided.
    k_idx = jnp.arange(max_count, dtype=jnp.int32)[None, :]
    last = jnp.maximum(counts - 1, 0)[:, None]
    cids = jnp.where(k_idx < counts[:, None], cids,
                     jnp.take_along_axis(cids, last, axis=1)).astype(jnp.int32)

    return dict(adj=adj.astype(jnp.int8),
                d_inv_sqrt=d_inv_sqrt.reshape(n_pad, 1),
                col_ids=cids, counts=counts,
                tm=tm, tk=tk, tmx=tmx, n_pad=n_pad,
                max_count=max_count, nnz_blocks=int(jnp.sum(counts)))


# --------------------------------------------------------------------------
# Forward
# --------------------------------------------------------------------------
def gcn_net_forward(x, graph, w1, b1, w2, b2):
    """graph = prepare_graph(edge_index, N).  Returns log_softmax logits (N, C)."""
    adj = graph["adj"]
    d_is = graph["d_inv_sqrt"]
    cids = graph["col_ids"]
    counts = graph["counts"]
    tm, tk, tmx = graph["tm"], graph["tk"], graph["tmx"]
    n_pad, max_count, nnzb = graph["n_pad"], graph["max_count"], graph["nnz_blocks"]

    n, f_in = x.shape
    hidden = w1.shape[1]
    c = w2.shape[1]

    f_pad = _round_up(f_in, LANE)
    h_pad = _round_up(hidden, LANE)
    c_pad = _round_up(c, LANE)

    # Lane-padded, bf16 parameters / features (biases stay f32).
    x_p = _pad2(x, n_pad, f_pad, jnp.bfloat16)
    w1_p = _pad2(w1, f_pad, h_pad, jnp.bfloat16)
    b1_p = _pad2(b1.reshape(1, -1), 1, h_pad, jnp.float32)
    w2_p = _pad2(w2, h_pad, c_pad, jnp.bfloat16)
    b2_p = _pad2(b2.reshape(1, -1), 1, c_pad, jnp.float32)

    # --- layer-1 feature transform: (X @ W1) * D^-1/2 (tiny, row-tiled) -----
    xw1 = pl.pallas_call(
        _transform_x_kernel,
        out_shape=jax.ShapeDtypeStruct((n_pad, h_pad), jnp.bfloat16),
        grid_spec=pltpu.PrefetchScalarGridSpec(
            num_scalar_prefetch=0,
            grid=(n_pad // tmx,),
            in_specs=[
                pl.BlockSpec((tmx, f_pad), lambda i: (i, 0)),
                pl.BlockSpec((tmx, 1), lambda i: (i, 0)),
                pl.BlockSpec((f_pad, h_pad), lambda i: (0, 0)),
            ],
            out_specs=pl.BlockSpec((tmx, h_pad), lambda i: (i, 0)),
        ),
        compiler_params=pltpu.CompilerParams(
            dimension_semantics=("parallel",),
            vmem_limit_bytes=VMEM_LIMIT),
    )(x_p, d_is, w1_p)

    grid2d = (n_pad // tm, max_count)
    par_arb = pltpu.CompilerParams(
        dimension_semantics=("parallel", "arbitrary"),
        vmem_limit_bytes=VMEM_LIMIT)

    # --- layer 1 aggregation (+ fused layer-2 transform) --------------------
    hw2 = pl.pallas_call(
        _layer1_kernel,
        out_shape=jax.ShapeDtypeStruct((n_pad, c_pad), jnp.bfloat16),
        grid_spec=pltpu.PrefetchScalarGridSpec(
            num_scalar_prefetch=2,
            grid=grid2d,
            in_specs=[
                pl.BlockSpec((tm, tk), lambda i, k, cid, cnt: (i, cid[i, k])),
                pl.BlockSpec((tk, h_pad), lambda i, k, cid, cnt: (cid[i, k], 0)),
                pl.BlockSpec((tm, 1), lambda i, k, cid, cnt: (i, 0)),
                pl.BlockSpec((1, h_pad), lambda i, k, cid, cnt: (0, 0)),
                pl.BlockSpec((h_pad, c_pad), lambda i, k, cid, cnt: (0, 0)),
            ],
            out_specs=pl.BlockSpec((tm, c_pad), lambda i, k, cid, cnt: (i, 0)),
            scratch_shapes=[pltpu.VMEM((tm, h_pad), jnp.float32)],
        ),
        compiler_params=par_arb,
        cost_estimate=pl.CostEstimate(
            flops=2 * nnzb * tm * tk * h_pad + 2 * n_pad * h_pad * c_pad,
            transcendentals=0,
            bytes_accessed=nnzb * tm * (tk + 2 * h_pad) + 2 * n_pad * c_pad),
    )(cids, counts, adj, xw1, d_is, b1_p, w2_p)

    # --- layer 2 aggregation + log_softmax ----------------------------------
    out_p = pl.pallas_call(
        functools.partial(_layer2_kernel, num_classes=c),
        out_shape=jax.ShapeDtypeStruct((n_pad, c_pad), jnp.float32),
        grid_spec=pltpu.PrefetchScalarGridSpec(
            num_scalar_prefetch=2,
            grid=grid2d,
            in_specs=[
                pl.BlockSpec((tm, tk), lambda i, k, cid, cnt: (i, cid[i, k])),
                pl.BlockSpec((tk, c_pad), lambda i, k, cid, cnt: (cid[i, k], 0)),
                pl.BlockSpec((tm, 1), lambda i, k, cid, cnt: (i, 0)),
                pl.BlockSpec((1, c_pad), lambda i, k, cid, cnt: (0, 0)),
            ],
            out_specs=pl.BlockSpec((tm, c_pad), lambda i, k, cid, cnt: (i, 0)),
            scratch_shapes=[pltpu.VMEM((tm, c_pad), jnp.float32)],
        ),
        compiler_params=par_arb,
        cost_estimate=pl.CostEstimate(
            flops=2 * nnzb * tm * tk * c_pad,
            transcendentals=2 * n_pad * c_pad,
            bytes_accessed=nnzb * tm * (tk + 2 * c_pad) + 4 * n_pad * c_pad),
    )(cids, counts, adj, hw2, d_is, b2_p)

    return out_p[:n, :c]


# TODO(synk): for very sparse graphs a CSR segment-sum kernel (row gather via
# scalar prefetch) would beat even the block-skipped dense form; the dense
# aggregation here matches the reference module's math exactly.


if __name__ == "__main__":
    # Small shapes consistent with the module: N nodes, F_in input features,
    # hidden=16 (fixed by the module), C output classes.
    N, F_IN, HIDDEN, C = 32, 8, 16, 4

    key = jax.random.PRNGKey(0)
    kx, ke, kw1, kw2 = jax.random.split(key, 4)

    # Node features.
    x = jax.random.normal(kx, (N, F_IN), dtype=jnp.float32)

    # Deterministic graph: ring edges + a few random edges, made symmetric.
    src_ring = jnp.arange(N, dtype=jnp.int32)
    dst_ring = (src_ring + 1) % N
    rand_src = jax.random.randint(ke, (16,), 0, N, dtype=jnp.int32)
    rand_dst = (rand_src + 3) % N
    src = jnp.concatenate([src_ring, dst_ring, rand_src, rand_dst])
    dst = jnp.concatenate([dst_ring, src_ring, rand_dst, rand_src])
    edge_index = jnp.stack([src, dst], axis=0)  # (2, E)

    # Glorot-like weights, zero biases — GCNConv(F_IN,16) / GCNConv(16,C) shapes.
    def glorot(k, shape):
        limit = jnp.sqrt(6.0 / (shape[0] + shape[1]))
        return jax.random.uniform(k, shape, jnp.float32, -limit, limit)

    w1 = glorot(kw1, (F_IN, HIDDEN))
    b1 = jnp.zeros((HIDDEN,), jnp.float32)
    w2 = glorot(kw2, (HIDDEN, C))
    b2 = jnp.zeros((C,), jnp.float32)

    # Graph is static (GCNConv cached=True): build once, reuse across calls.
    graph = prepare_graph(edge_index, N)

    out = gcn_net_forward(x, graph, w1, b1, w2, b2)
    jax.block_until_ready(out)
    assert out.shape == (N, C)

    # Sanity 1: log_softmax rows should sum (in prob space) to 1.
    row_sums = jnp.sum(jnp.exp(out), axis=1)
    assert bool(jnp.all(jnp.abs(row_sums - 1.0) < 1e-3))

    # Sanity 2: pure-JAX f32 dense reference (bf16 tolerance).
    adj_ref = jnp.zeros((N, N)).at[edge_index[0], edge_index[1]].set(1.0)
    adj_ref = adj_ref.at[jnp.arange(N), jnp.arange(N)].set(1.0)
    deg = adj_ref.sum(axis=1)
    dis = jnp.where(deg > 0, 1.0 / jnp.sqrt(deg), 0.0)
    a_norm = dis[:, None] * adj_ref * dis[None, :]
    h_ref = jax.nn.relu(a_norm @ (x @ w1) + b1)
    ref = jax.nn.log_softmax(a_norm @ (h_ref @ w2) + b2, axis=1)
    assert bool(jnp.max(jnp.abs(out - ref)) < 0.15)

    print("KERNEL_OK")
</pallas_src>

<mosaic_0001>
module attributes {stable_mosaic.version = 11 : i64} {
  func.func @_transform_x_kernel(%arg0: i32, %arg1: memref<128x128xbf16, #tpu.memory_space<vmem>>, %arg2: memref<128x1xf32, #tpu.memory_space<vmem>>, %arg3: memref<128x128xbf16, #tpu.memory_space<vmem>>, %arg4: memref<128x128xbf16, #tpu.memory_space<vmem>>) attributes {dimension_semantics = [#tpu.dimension_semantics<parallel>], iteration_bounds = array<i64: 1>, scalar_prefetch = 0 : i64, scratch_operands = 0 : i64, tpu.core_type = #tpu.core_type<tc>, window_params = [{transform_indices = @transform_0, window_bounds = array<i64: 128, 128>}, {transform_indices = @transform_1, window_bounds = array<i64: 128, 1>}, {pipeline_mode = #tpu.pipeline_mode<synchronous>, transform_indices = @transform_2, window_bounds = array<i64: 128, 128>}, {transform_indices = @transform_3, window_bounds = array<i64: 128, 128>}]} {
    %c0 = arith.constant 0 : index
    %c0_0 = arith.constant 0 : index
    %0 = vector.load %arg1[%c0, %c0_0] : memref<128x128xbf16, #tpu.memory_space<vmem>>, vector<128x128xbf16>
    %c0_1 = arith.constant 0 : index
    %c0_2 = arith.constant 0 : index
    %1 = vector.load %arg3[%c0_1, %c0_2] : memref<128x128xbf16, #tpu.memory_space<vmem>>, vector<128x128xbf16>
    %cst = arith.constant dense<0.000000e+00> : vector<128x128xf32>
    %2 = tpu.matmul %0, %1, %cst {dimension_numbers = #tpu.dot_dimension_numbers<[1], [0], [0], [1], [0, 0, 1, 1], [], []>} : vector<128x128xbf16>, vector<128x128xbf16>, vector<128x128xf32> -> vector<128x128xf32>
    %c0_3 = arith.constant 0 : index
    %c0_4 = arith.constant 0 : index
    %3 = vector.load %arg2[%c0_3, %c0_4] : memref<128x1xf32, #tpu.memory_space<vmem>>, vector<128x1xf32>
    %4 = vector.broadcast %3 : vector<128x1xf32> to vector<128x128xf32>
    %5 = arith.mulf %2, %4 : vector<128x128xf32>
    %6 = arith.truncf %5 : vector<128x128xf32> to vector<128x128xbf16>
    %c0_5 = arith.constant 0 : index
    %c0_6 = arith.constant 0 : index
    %7 = vector.load %arg4[%c0_5, %c0_6] : memref<128x128xbf16, #tpu.memory_space<vmem>>, vector<128x128xbf16>
    tpu.vector_store %arg4[%c0_5, %c0_6], %6 {strides = array<i32>} : memref<128x128xbf16, #tpu.memory_space<vmem>>, vector<128x128xbf16>,
    return
  }
  func.func @transform_0(%arg0: i32) -> (i32, i32) {
    %c0_i32 = arith.constant 0 : i32
    %c0_i32_0 = arith.constant 0 : i32
    return %arg0, %c0_i32 : i32, i32
  }
  func.func @transform_1(%arg0: i32) -> (i32, i32) {
    %c0_i32 = arith.constant 0 : i32
    %c0_i32_0 = arith.constant 0 : i32
    return %arg0, %c0_i32 : i32, i32
  }
  func.func @transform_2(%arg0: i32) -> (i32, i32) {
    %c0_i32 = arith.constant 0 : i32
    %c0_i32_0 = arith.constant 0 : i32
    %c0_i32_1 = arith.constant 0 : i32
    return %c0_i32, %c0_i32_0 : i32, i32
  }
  func.func @transform_3(%arg0: i32) -> (i32, i32) {
    %c0_i32 = arith.constant 0 : i32
    %c0_i32_0 = arith.constant 0 : i32
    return %arg0, %c0_i32 : i32, i32
  }
}

</mosaic_0001>

<bundles_post_ra>
// kernel: tpu_custom_call.1
= control target key start
LH: loop header
LB: loop body
LE: loop exit
PB: predicated region body
PF: predicated region fallthrough
CT: control target
= control target key end

     0   :  { %v654_v2 = vmov 0   ;;  %s786_s0 = inlined_call_operand.vmem [shape: bf16[128,128], index: 0, kind: input, shape index: {}]   ;;  %s787_s1 = inlined_call_operand.vmem [shape: f32[128,1], index: 1, kind: input, shape index: {}]   ;;  %s788_s2 = inlined_call_operand.vmem [shape: bf16[128,128], index: 2, kind: input, shape index: {}]   ;;  %s789_s3 = inlined_call_operand.hbm [shape: bf16[128,128], index: 3, kind: output, shape index: {}]  }
   0x1   :  { %v614_v0 = vld [vmem:[%s788_s2] sm:$0xff]   ;;  %v615_v1 = vld [vmem:[%s788_s2 + $0x8] sm:$0xff]   ;;  %613 = vset.pattern.permute.xlu1 %v654_v2  ;;  %612 = vset.pattern.permute.xlu0 %v654_v2  ;;  %v616_v3 = vld [vmem:[%s788_s2 + $0x10] sm:$0xff]  }
   0x2   :  { %560 = vmatprep.subr.bf16.mxu0 %v614_v0  ;;  %592 = vmatprep.subr.bf16.mxu1 %v614_v0  ;;  %v617_v4 = vld [vmem:[%s788_s2 + $0x18] sm:$0xff]   ;;  %v622_v5 = vld [vmem:[%s786_s0] sm:$0xff]   ;;  %v619_v8 = vld [vmem:[%s788_s2 + $0x28] sm:$0xff]  }
   0x3   :  { %561 = vmatpush3.bf16.msra.mxu0 %v614_v0  ;;  %600 = vmatpush3.bf16.msra.mxu1 %v614_v0  ;;  %v623_v6 = vld [vmem:[%s786_s0 + $0x20] sm:$0xff]   ;;  %v243_v9 = vld [vmem:[%s787_s1 + $0x10] sm:$0xff]  ;;  %v244_v11 = vld [vmem:[%s787_s1 + $0x18] sm:$0xff] }
   0x4   :  { %562 = vmatprep.subr.bf16.mxu0 %v615_v1  ;;  %593 = vmatprep.subr.bf16.mxu1 %v615_v1  ;;  %v618_v7 = vld [vmem:[%s788_s2 + $0x20] sm:$0xff]   ;;  %v242_v12 = vld [vmem:[%s787_s1 + $0x8] sm:$0xff]  ;;  %v620_v13 = vld [vmem:[%s788_s2 + $0x30] sm:$0xff]  }
   0x5   :  { %576 = vmatprep.mubr.bf16.mxu0 %v622_v5  ;;  %584 = vmatprep.mubr.bf16.mxu1 %v623_v6  ;;  %v241_v10 = vld [vmem:[%s787_s1] sm:$0xff] }
   0x6   :  { %269 = vperm.xlu1 %613, %v243_v9   ;;  %259 = vperm.xlu0 %612, %v241_v10  }
   0x7   :  { %563 = vmatpush3.bf16.msra.mxu0 %v615_v1  ;;  %601 = vmatpush3.bf16.msra.mxu1 %v615_v1 }
   0x8   :  { %564 = vmatprep.subr.bf16.mxu0 %v616_v3  ;;  %594 = vmatprep.subr.bf16.mxu1 %v616_v3 }
   0xa   :  { %274 = vperm.xlu1 %613, %v244_v11   ;;  %264 = vperm.xlu0 %612, %v242_v12  }
   0xb   :  { %565 = vmatpush3.bf16.msra.mxu0 %v616_v3  ;;  %602 = vmatpush3.bf16.msra.mxu1 %v616_v3 }
   0xc   :  { %566 = vmatprep.subr.bf16.mxu0 %v617_v4  ;;  %595 = vmatprep.subr.bf16.mxu1 %v617_v4 }
   0xf   :  { %567 = vmatpush3.bf16.msra.mxu0 %v617_v4  ;;  %603 = vmatpush3.bf16.msra.mxu1 %v617_v4 }
  0x10   :  { %568 = vmatprep.subr.bf16.mxu0 %v618_v7  ;;  %596 = vmatprep.subr.bf16.mxu1 %v618_v7 }
  0x13   :  { %569 = vmatpush3.bf16.msra.mxu0 %v618_v7  ;;  %604 = vmatpush3.bf16.msra.mxu1 %v618_v7 }
  0x14   :  { %570 = vmatprep.subr.bf16.mxu0 %v619_v8  ;;  %597 = vmatprep.subr.bf16.mxu1 %v619_v8 }
  0x15   :  { %8 = vsyncpa [#allocation3], 0  ;;  %v246_v14 = vld [vmem:[%s787_s1 + $0x28] sm:$0xff]  ;;  %v245_v15 = vld [vmem:[%s787_s1 + $0x20] sm:$0xff] }
  0x16   :  { %v621_v16 = vld [vmem:[%s788_s2 + $0x38] sm:$0xff]   ;;  %284 = vperm.xlu1 %613, %v246_v14   ;;  %279 = vperm.xlu0 %612, %v245_v15   ;;  %v247_v18 = vld [vmem:[%s787_s1 + $0x30] sm:$0xff]  ;;  %v624_v19 = vld [vmem:[%s786_s0 + $0x8] sm:$0xff]  }
  0x17   :  { %571 = vmatpush3.bf16.msra.mxu0 %v619_v8  ;;  %605 = vmatpush3.bf16.msra.mxu1 %v619_v8  ;;  %v248_v17 = vld [vmem:[%s787_s1 + $0x38] sm:$0xff]  ;;  %v625_v20 = vld [vmem:[%s786_s0 + $0x28] sm:$0xff]   ;;  %v249_v22 = vld [vmem:[%s787_s1 + $0x40] sm:$0xff] }
  0x18   :  { %572 = vmatprep.subr.bf16.mxu0 %v620_v13  ;;  %598 = vmatprep.subr.bf16.mxu1 %v620_v13  ;;  %v250_v21 = vld [vmem:[%s787_s1 + $0x48] sm:$0xff]  ;;  %v626_v23 = vld [vmem:[%s786_s0 + $0x10] sm:$0xff]   ;;  %v252_v25 = vld [vmem:[%s787_s1 + $0x58] sm:$0xff] }
  0x19   :  { %v627_v24 = vld [vmem:[%s786_s0 + $0x30] sm:$0xff]   ;;  %v628_v27 = vld [vmem:[%s786_s0 + $0x18] sm:$0xff]   ;;  %v254_v29 = vld [vmem:[%s787_s1 + $0x68] sm:$0xff] }
  0x1a   :  { %294 = vperm.xlu1 %613, %v248_v17   ;;  %289 = vperm.xlu0 %612, %v247_v18   ;;  %v251_v26 = vld [vmem:[%s787_s1 + $0x50] sm:$0xff]  ;;  %v629_v28 = vld [vmem:[%s786_s0 + $0x38] sm:$0xff]   ;;  %v253_v30 = vld [vmem:[%s787_s1 + $0x60] sm:$0xff]  ;;  %s655_s0 = smov [#allocation2]  }
  0x1b   :  { %573 = vmatpush3.bf16.msra.mxu0 %v620_v13  ;;  %606 = vmatpush3.bf16.msra.mxu1 %v620_v13  ;;  %v256_v31 = vld [vmem:[%s787_s1 + $0x78] sm:$0xff]  ;;  %v255_v32 = vld [vmem:[%s787_s1 + $0x70] sm:$0xff]  ;;  %s438_s1 = sshll.u32 %s655_s0, 4  ;;  %s439_s1 = int_to_ptr.vmem [resolvable:$true] %s438_s1 }
  0x1c   :  { %574 = vmatprep.subr.bf16.mxu0 %v621_v16  ;;  %599 = vmatprep.subr.bf16.mxu1 %v621_v16  ;;  %s630_s21 = scalar_lea.vmem %s439_s1, 1024  ;;  %p635_p1 = scmp.lt.s32.totalorder %s439_s1, %s439_s1 }
  0x1d   :  { %p631_p0 = scmp.ne.s32.totalorder %s439_s1, %s630_s21  ;;  %p636_p2 = scmp.lt.s32.totalorder %s630_s21, %s630_s21 }
  0x1e   :  { %304 = vperm.xlu1 %613, %v250_v21   ;;  %299 = vperm.xlu0 %612, %v249_v22  }
  0x1f   :  { %575 = vmatpush3.bf16.msra.mxu0 %v621_v16  ;;  %607 = vmatpush3.bf16.msra.mxu1 %v621_v16  ;;  %p637_p3 = por %p636_p2, %p635_p1 }
  0x21   :  { %p638_p4 = pnand %p637_p3, %p631_p0 }
  0x22   :  { %577 = vmatmul.mubr.bf16.vlgmr.msra.gmra.mrb[0].mxu0 %v624_v19  ;;  %585 = vmatmul.mubr.bf16.vlgmr.msra.gmra.mrb[0].mxu1 %v625_v20 }
  0x23   :  { %580 = vmatprep.mubr.bf16.mxu0 %v626_v23  ;;  %588 = vmatprep.mubr.bf16.mxu1 %v627_v24 }
  0x24   :  { %314 = vperm.xlu1 %613, %v252_v25   ;;  %309 = vperm.xlu0 %612, %v251_v26  }
  0x28   :  { %324 = vperm.xlu1 %613, %v254_v29   ;;  %319 = vperm.xlu0 %612, %v253_v30  }
  0x2a   :  { %581 = vmatmul.mubr.bf16.gmra.mrb[4].mxu0 %v628_v27  ;;  %589 = vmatmul.mubr.bf16.gmra.mrb[4].mxu1 %v629_v28 }
  0x2c   :  { %334 = vperm.xlu1 %613, %v256_v31   ;;  %329 = vperm.xlu0 %612, %v255_v32  }
  0x85   :  { %v270_v33 = vpop.permute.xlu1 %269  ;;  %v260_v34 = vpop.permute.xlu0 %259 }
  0x89   :  { %v275_v35 = vpop.permute.xlu1 %274  ;;  %v265_v36 = vpop.permute.xlu0 %264 }
  0x95   :  { %v285_v37 = vpop.permute.xlu1 %284  ;;  %v280_v38 = vpop.permute.xlu0 %279 }
  0x99   :  { %v295_v39 = vpop.permute.xlu1 %294  ;;  %v290_v40 = vpop.permute.xlu0 %289 }
  0x9d   :  { %v305_v41 = vpop.permute.xlu1 %304  ;;  %v300_v42 = vpop.permute.xlu0 %299 }
  0xa3   :  { %v315_v43 = vpop.permute.xlu1 %314  ;;  %v310_v44 = vpop.permute.xlu0 %309 }
  0xa7   :  { %v325_v45 = vpop.permute.xlu1 %324  ;;  %v320_v46 = vpop.permute.xlu0 %319 }
  0xab   :  { %v335_v3 = vpop.permute.xlu1 %334  ;;  %v330_v4 = vpop.permute.xlu0 %329 }
  0xf5   :  { %v578_v47 = vpop.f32.mrb[0].mxu0  ;;  %v586_v48 = vpop.f32.mrb[0].mxu1 }
  0xf6   :  { %v178_v49 = vpop.f32.mrb[1].mxu0  ;;  %v210_v50 = vpop.f32.mrb[1].mxu1  ;;  %v339_v53 = vmul.f32 %v578_v47, %v270_v33  ;;  %v347_v54 = vmul.f32 %v586_v48, %v310_v44 }
  0xf7   :  { %v579_v51 = vpop.f32.mrb[2].mxu0  ;;  %v587_v52 = vpop.f32.mrb[2].mxu1  ;;  %v337_v59 = vmul.f32 %v260_v34, %v178_v49  ;;  %v345_v60 = vmul.f32 %v300_v42, %v210_v50 }
  0xf8   :  { %v340_v55 = vmul.f32 %v579_v51, %v275_v35  ;;  %v348_v56 = vmul.f32 %v587_v52, %v315_v43  ;;  %v181_v57 = vpop.f32.mrb[3].mxu0  ;;  %v213_v58 = vpop.f32.mrb[3].mxu1 }
  0xf9   :  { %v338_v61 = vmul.f32 %v265_v36, %v181_v57  ;;  %v346_v62 = vmul.f32 %v305_v41, %v213_v58 }
  0xfa   :  { %v505_v63 = vpack.c.bf16 %v340_v55, %v339_v53  ;;  %v525_v0 = vpack.c.bf16 %v348_v56, %v347_v54 }
  0xfb   :  { %v500_v1 = vpack.c.bf16 %v338_v61, %v337_v59  ;;  %v520_v2 = vpack.c.bf16 %v346_v62, %v345_v60 }
  0xfc   :  { %537 = vst [vmem:[#allocation2 + $0x8] sm:$0xff] %v505_v63   ;;  %541 = vst [vmem:[#allocation2 + $0x28] sm:$0xff] %v525_v0  }
  0xfd   :  { %501 = vst [vmem:[#allocation2] sm:$0xff] %v500_v1   ;;  %540 = vst [vmem:[#allocation2 + $0x20] sm:$0xff] %v520_v2   ;;  %v582_v5 = vpop.f32.mrb[4].mxu0  ;;  %v590_v6 = vpop.f32.mrb[4].mxu1 }
  0xfe   :  { %v194_v7 = vpop.f32.mrb[5].mxu0  ;;  %v226_v8 = vpop.f32.mrb[5].mxu1  ;;  %v343_v11 = vmul.f32 %v582_v5, %v290_v40  ;;  %v351_v12 = vmul.f32 %v590_v6, %v330_v4 }
  0xff   :  { %v583_v9 = vpop.f32.mrb[6].mxu0  ;;  %v591_v10 = vpop.f32.mrb[6].mxu1  ;;  %v341_v17 = vmul.f32 %v280_v38, %v194_v7  ;;  %v349_v18 = vmul.f32 %v320_v46, %v226_v8 }
 0x100   :  { %v344_v13 = vmul.f32 %v583_v9, %v295_v39  ;;  %v352_v14 = vmul.f32 %v591_v10, %v335_v3  ;;  %v197_v15 = vpop.f32.mrb[7].mxu0  ;;  %v229_v16 = vpop.f32.mrb[7].mxu1 }
 0x101   :  { %v342_v19 = vmul.f32 %v285_v37, %v197_v15  ;;  %v350_v20 = vmul.f32 %v325_v45, %v229_v16 }
 0x102   :  { %v515_v21 = vpack.c.bf16 %v344_v13, %v343_v11  ;;  %v535_v22 = vpack.c.bf16 %v352_v14, %v351_v12 }
 0x103   :  { %v510_v23 = vpack.c.bf16 %v342_v19, %v341_v17  ;;  %v530_v24 = vpack.c.bf16 %v350_v20, %v349_v18 }
 0x104   :  { %539 = vst [vmem:[#allocation2 + $0x18] sm:$0xff] %v515_v21   ;;  %543 = vst [vmem:[#allocation2 + $0x38] sm:$0xff] %v535_v22  }
 0x105   :  { %538 = vst [vmem:[#allocation2 + $0x10] sm:$0xff] %v510_v23   ;;  %542 = vst [vmem:[#allocation2 + $0x30] sm:$0xff] %v530_v24  }
 0x106   :  { %641 = shalt.err (!%p638_p4)
}
 0x107   :  { %s642_s23 = scalar_lea.hbm %s789_s3, 1024 }
 0x108   :  { %p643_p5 = scmp.ne.s32.totalorder %s789_s3, %s642_s23  ;;  %p646_p6 = scmp.lt.u32.totalorder %s642_s23, %s789_s3 }
 0x10a   :  { %p648_p7 = pnand %p646_p6, %p643_p5 }
 0x10c   :  { %651 = shalt.err (!%p648_p7)
}
 0x10d   :  { %s656_s28 = smov 64   ;;  %s657_s29 = smov 4  }
 0x10e   :  { %444 = dma.vmem_to_hbm [thread:$0]  %s439_s1, 1024, %s789_s3, [#allocation3], %s656_s28, %s656_s28, %s657_s29  }
 0x10f   :  { %652 = dma.done.wait [#allocation3], 1024  }
 0x110   :  { %653 = vsyncadd [#allocation3], 4294966272 }
 0x111   :  { %448 = vsyncpa [#allocation3], 1 }

</bundles_post_ra>
